<compile_context>
chip_gen: v6e
topology: v6e:2x2x1
jax: 0.10.0
libtpu: 0.0.40
codegen_flags: <defaults>
</compile_context>

<pallas_src>
import math

import jax
import jax.numpy as jnp
import numpy as np
from jax import lax
from jax.experimental import pallas as pl
from jax.experimental.pallas import tpu as pltpu

_LANES = 128
_PAIR = 2 * _LANES          # each kernel row emits 256 samples (cos half + sin half)
_MAX_BLOCK_ROWS = 512       # (512, 256) f32 = 512 KiB per buffer (1 MiB double-buffered)


def _boxmuller_kernel(bits_ref, out_ref):
    """bits_ref: (TR, 256) uint32  ->  out_ref: (TR, 256) f32 ~ N(0, 1)."""
    bits = bits_ref[...]
    b1 = bits[:, :_LANES]
    b2 = bits[:, _LANES:]

    # Mantissa trick: (bits >> 9) | 0x3f800000 bitcasts to f32 in [1, 2).
    one_bits = jnp.uint32(0x3F800000)
    f1 = lax.bitcast_convert_type((b1 >> 9) | one_bits, jnp.float32)  # [1, 2)
    f2 = lax.bitcast_convert_type((b2 >> 9) | one_bits, jnp.float32)  # [1, 2)
    u1 = jnp.float32(2.0) - f1          # (0, 1]  -> log never sees exactly 0
    u2 = f2 - jnp.float32(1.0)          # [0, 1)

    r = jnp.sqrt(jnp.float32(-2.0) * jnp.log(u1))
    theta = jnp.float32(2.0 * math.pi) * u2

    # Both Box-Muller branches: two independent samples per uniform pair.
    out_ref[:, :_LANES] = r * jnp.cos(theta)
    out_ref[:, _LANES:] = r * jnp.sin(theta)


def mock_hf_forward(x, output_shape=(1, 10, 224, 224), key=None):
    """Pallas equivalent of MockHuggingFaceModel.forward.

    `x` is accepted for API parity but (like the PyTorch module) is unused.
    Returns float32 Gaussian noise of `output_shape` (NCHW).  Pass a fresh
    `key` per call to emulate torch.randn's fresh draws.
    """
    del x  # the reference module ignores its input
    if key is None:
        key = jax.random.PRNGKey(0)

    total = int(np.prod(output_shape))
    rows = pl.cdiv(total, _PAIR)        # each row yields 256 samples
    rows = -(-rows // 8) * 8            # sublane alignment
    block_rows = min(_MAX_BLOCK_ROWS, rows)
    num_tiles = pl.cdiv(rows, block_rows)

    bits = jax.random.bits(key, (rows, _PAIR), dtype=jnp.uint32)

    compiler_params = None
    if jax.default_backend() == "tpu":
        # 1-D parallel grid -> double-buffered writeback + megacore sharding on v7x.
        compiler_params = pltpu.CompilerParams(dimension_semantics=("parallel",))

    out2d = pl.pallas_call(
        _boxmuller_kernel,
        out_shape=jax.ShapeDtypeStruct((rows, _PAIR), jnp.float32),
        grid=(num_tiles,),
        in_specs=[pl.BlockSpec((block_rows, _PAIR), lambda i: (i, 0))],
        out_specs=pl.BlockSpec((block_rows, _PAIR), lambda i: (i, 0)),
        compiler_params=compiler_params,
    )(bits)

    if rows * _PAIR == total:
        # No padding -> pure metadata reshape, no extra HBM copy.
        return out2d.reshape(output_shape)
    return out2d.reshape(-1)[:total].reshape(output_shape)


if __name__ == "__main__":
    key = jax.random.PRNGKey(0)
    kx, kn = jax.random.split(key)
    # Small, shape-consistent example: NCHW input (ignored by the model) and a
    # small NCHW output_shape analogous to the default (1, 10, 224, 224).
    x = jax.random.normal(kx, (2, 4, 16, 16), dtype=jnp.float32)
    output_shape = (1, 10, 16, 16)

    out = mock_hf_forward(x, output_shape=output_shape, key=kn)
    out = jax.block_until_ready(out)

    assert out.shape == output_shape, out.shape
    assert out.dtype == jnp.float32, out.dtype
    assert bool(jnp.all(jnp.isfinite(out)))
    # Sanity: roughly standard normal.
    mean = float(jnp.mean(out))
    std = float(jnp.std(out))
    assert abs(mean) < 0.2, mean
    assert 0.8 < std < 1.2, std

    print("KERNEL_OK")
</pallas_src>

<mosaic_0001>
module attributes {stable_mosaic.version = 11 : i64} {
  func.func @_boxmuller_kernel(%arg0: i32, %arg1: memref<16x256xi32, #tpu.memory_space<vmem>>, %arg2: memref<16x256xf32, #tpu.memory_space<vmem>>) attributes {dimension_semantics = [#tpu.dimension_semantics<arbitrary>], iteration_bounds = array<i64: 1>, scalar_prefetch = 0 : i64, scratch_operands = 0 : i64, tpu.core_type = #tpu.core_type<tc>, window_params = [{transform_indices = @transform_0, window_bounds = array<i64: 16, 256>}, {transform_indices = @transform_1, window_bounds = array<i64: 16, 256>}]} {
    %c0 = arith.constant 0 : index
    %c0_0 = arith.constant 0 : index
    %0 = vector.load %arg1[%c0, %c0_0] : memref<16x256xi32, #tpu.memory_space<vmem>>, vector<16x256xi32>
    %1 = vector.extract_strided_slice %0 {offsets = [0, 0], sizes = [16, 128], strides = [1, 1]} : vector<16x256xi32> to vector<16x128xi32>
    %2 = vector.extract_strided_slice %0 {offsets = [0, 128], sizes = [16, 128], strides = [1, 1]} : vector<16x256xi32> to vector<16x128xi32>
    %c9_i32 = arith.constant 9 : i32
    %3 = vector.broadcast %c9_i32 : i32 to vector<16x128xi32>
    %4 = arith.shrui %1, %3 : vector<16x128xi32>
    %c1065353216_i32 = arith.constant 1065353216 : i32
    %5 = vector.broadcast %c1065353216_i32 : i32 to vector<16x128xi32>
    %6 = arith.ori %4, %5 : vector<16x128xi32>
    %7 = tpu.bitcast %6 : vector<16x128xi32> -> vector<16x128xf32>
    %c9_i32_1 = arith.constant 9 : i32
    %8 = vector.broadcast %c9_i32_1 : i32 to vector<16x128xi32>
    %9 = arith.shrui %2, %8 : vector<16x128xi32>
    %c1065353216_i32_2 = arith.constant 1065353216 : i32
    %10 = vector.broadcast %c1065353216_i32_2 : i32 to vector<16x128xi32>
    %11 = arith.ori %9, %10 : vector<16x128xi32>
    %12 = tpu.bitcast %11 : vector<16x128xi32> -> vector<16x128xf32>
    %cst = arith.constant 2.000000e+00 : f32
    %13 = vector.broadcast %cst : f32 to vector<16x128xf32>
    %14 = arith.subf %13, %7 : vector<16x128xf32>
    %cst_3 = arith.constant 1.000000e+00 : f32
    %15 = vector.broadcast %cst_3 : f32 to vector<16x128xf32>
    %16 = arith.subf %12, %15 : vector<16x128xf32>
    %17 = math.log %14 : vector<16x128xf32>
    %cst_4 = arith.constant -2.000000e+00 : f32
    %18 = vector.broadcast %cst_4 : f32 to vector<16x128xf32>
    %19 = arith.mulf %18, %17 : vector<16x128xf32>
    %20 = math.sqrt %19 : vector<16x128xf32>
    %cst_5 = arith.constant 6.28318548 : f32
    %21 = vector.broadcast %cst_5 : f32 to vector<16x128xf32>
    %22 = arith.mulf %21, %16 : vector<16x128xf32>
    %23 = math.cos %22 : vector<16x128xf32>
    %24 = arith.mulf %20, %23 : vector<16x128xf32>
    %c0_6 = arith.constant 0 : index
    %c0_7 = arith.constant 0 : index
    %25 = vector.load %arg2[%c0_6, %c0_7] : memref<16x256xf32, #tpu.memory_space<vmem>>, vector<16x128xf32>
    tpu.vector_store %arg2[%c0_6, %c0_7], %24 {strides = array<i32>} : memref<16x256xf32, #tpu.memory_space<vmem>>, vector<16x128xf32>,
    %26 = math.sin %22 : vector<16x128xf32>
    %27 = arith.mulf %20, %26 : vector<16x128xf32>
    %c0_8 = arith.constant 0 : index
    %c128 = arith.constant 128 : index
    %28 = vector.load %arg2[%c0_8, %c128] : memref<16x256xf32, #tpu.memory_space<vmem>>, vector<16x128xf32>
    tpu.vector_store %arg2[%c0_8, %c128], %27 {strides = array<i32>} : memref<16x256xf32, #tpu.memory_space<vmem>>, vector<16x128xf32>,
    return
  }
  func.func @transform_0(%arg0: i32) -> (i32, i32) {
    %c0_i32 = arith.constant 0 : i32
    %c0_i32_0 = arith.constant 0 : i32
    return %arg0, %c0_i32 : i32, i32
  }
  func.func @transform_1(%arg0: i32) -> (i32, i32) {
    %c0_i32 = arith.constant 0 : i32
    %c0_i32_0 = arith.constant 0 : i32
    return %arg0, %c0_i32 : i32, i32
  }
}

</mosaic_0001>

<bundles_post_ra>
// kernel: tpu_custom_call.1
= control target key start
LH: loop header
LB: loop body
LE: loop exit
PB: predicated region body
PF: predicated region fallthrough
CT: control target
= control target key end

     0   :  { %6 = vsyncpa [#allocation3], 0  ;;  %s738_s0 = inlined_call_operand.hbm [shape: u32[16,256], index: 0, kind: input, shape index: {}]   ;;  %s739_s1 = inlined_call_operand.hbm [shape: f32[16,256], index: 1, kind: output, shape index: {}]  }
   0x1   :  { %7 = vsyncpa [#allocation4], 0  ;;  %s600_s6 = smov [#allocation2]  }
   0x2   :  { %s13_s7 = sshll.u32 %s600_s6, 4  ;;  %s14_s7 = int_to_ptr.vmem [resolvable:$true] %s13_s7 }
   0x3   :  { %s564_s8 = scalar_lea.vmem %s14_s7, 512  ;;  %p569_p1 = scmp.lt.s32.totalorder %s14_s7, %s14_s7 }
   0x4   :  { %p565_p0 = scmp.ne.s32.totalorder %s14_s7, %s564_s8  ;;  %p570_p2 = scmp.lt.s32.totalorder %s564_s8, %s564_s8 }
   0x6   :  { %p571_p3 = por %p570_p2, %p569_p1 }
   0x8   :  { %p572_p4 = pnand %p571_p3, %p565_p0 }
   0xa   :  { %575 = shalt.err (!%p572_p4)
}
   0xb   :  { %s601_s9 = smov 256   ;;  %s602_s10 = smov 16  }
   0xc   :  { %19 = dma.hbm_to_vmem [thread:$0]  %s738_s0, 512, %s14_s7, [#allocation3], %s601_s9, %s601_s9, %s602_s10  }
   0xd   :  { %596 = dma.done.wait [#allocation3], 512  }
   0xe   :  { %597 = vsyncadd [#allocation3], 4294966784  ;;  %v24_v0 = vld [vmem:[#allocation2 + $0x8] sm:$0xff]  ;;  %v26_v2 = vld [vmem:[#allocation2 + $0x18] sm:$0xff]  ;;  %v603_v28 = vmov 683565275  }
   0xf   :  { %v33_v1 = vshrl.u32 %v24_v0, 9  ;;  %v34_v3 = vshrl.u32 %v26_v2, 9  ;;  %v23_v18 = vld [vmem:[#allocation2] sm:$0xff]  ;;  %v604_v30 = vmov 2475754826   ;;  %s609_s0 = smov [#allocation5]  }
  0x10   :  { %v27_v22 = vshrl.u32 %v23_v18, 9  ;;  %v605_v32 = vmov 2131351028   ;;  %v606_v34 = vmov 2102212464   ;;  %s492_s13 = sshll.u32 %s609_s0, 4  ;;  %s493_s13 = int_to_ptr.vmem [resolvable:$true] %s492_s13 }
  0x11   :  { %v35_v4 = vor.u32 1065353216, %v33_v1  ;;  %v36_v5 = vor.u32 1065353216, %v34_v3  ;;  %v607_v39 = vmov 920167782   ;;  %v608_v44 = vmov 1326507024   ;;  %p581_p6 = scmp.lt.s32.totalorder %s493_s13, %s493_s13 }
  0x12   :  { %v636_v36 = vor.u32 1065353216, %v27_v22  ;;  %s576_s14 = scalar_lea.vmem %s493_s13, 512 }
  0x13   :  { %v504_v6 = vadd.f32 -1.0, %v35_v4  ;;  %v505_v7 = vadd.f32 -1.0, %v36_v5  ;;  %p577_p5 = scmp.ne.s32.totalorder %s493_s13, %s576_s14  ;;  %p582_p7 = scmp.lt.s32.totalorder %s576_s14, %s576_s14 }
  0x15   :  { %v626_v8 = vmul.f32 6.2831855, %v504_v6  ;;  %v628_v9 = vmul.f32 6.2831855, %v505_v7  ;;  %v39_v7 = vsub.f32 2.0, %v636_v36  ;;  %p583_p8 = por %p582_p7, %p581_p6 }
  0x17   :  { %v68_v10 = vand.u32 2139095040, %v626_v8  ;;  %v171_v11 = vand.u32 2139095040, %v628_v9  ;;  %v65_v14 = vand.u32 2147483647, %v626_v8  ;;  %v168_v47 = vand.u32 2147483647, %v628_v9  ;;  %p584_p9 = pnand %p583_p8, %p577_p5 }
  0x18   :  { %540 = vlog2.f32 %v39_v7  ;;  %vm67_vm13 = vcmp.lt.s32.totalorder %v626_v8, 0 }
  0x19   :  { %v69_v12 = vshrl.u32 %v68_v10, 23  ;;  %v172_v13 = vshrl.u32 %v171_v11, 23  ;;  %v72_v20 = vand.u32 8388607, %v65_v14  ;;  %v175_v6 = vand.u32 8388607, %v168_v47 }
  0x1a   :  { %vm689_vm14 = vcmp.le.f32.partialorder %v65_v14, 0.7853982 }
  0x1b   :  { %v506_v15 = vadd.s32 4294967169, %v69_v12  ;;  %v510_v16 = vadd.s32 4294967169, %v172_v13  ;;  %v73_v24 = vor.u32 8388608, %v72_v20  ;;  %v176_v22 = vor.u32 8388608, %v175_v6 }
  0x1d   :  { %v75_v17 = vadd.s32 1, %v506_v15  ;;  %v178_v19 = vadd.s32 1, %v510_v16  ;;  %v113_v46 = vshll.u32 %v73_v24, 8 }
  0x1f   :  { %vm76_vm0 = vcmp.gt.s32.totalorder %v75_v17, 0  ;;  %vm179_vm1 = vcmp.gt.s32.totalorder %v178_v19, 0 }
  0x20   :  { %v77_v21 = vsel %vm76_vm0, %v75_v17, 0  ;;  %v180_v27 = vsel %vm179_vm1, %v178_v19, 0  ;;  %vm170_vm1 = vcmp.lt.s32.totalorder %v628_v9, 0 }
  0x21   :  { %v79_v23 = vand.u32 31, %v77_v21  ;;  %v78_v25 = vshrl.u32 %v77_v21, 5  ;;  %v182_v48 = vand.u32 31, %v180_v27  ;;  %v181_v10 = vshrl.u32 %v180_v27, 5 }
  0x23   :  { %v80_v26 = vsub.s32 32, %v79_v23  ;;  %v82_v29 = vshll.u32 %v603_v28, %v79_v23  ;;  %v85_v31 = vshll.u32 %v604_v30, %v79_v23  ;;  %v88_v33 = vshll.u32 %v605_v32, %v79_v23 }
  0x24   :  { %v91_v35 = vshll.u32 %v606_v34, %v79_v23  ;;  %v94_v40 = vshll.u32 %v607_v39, %v79_v23  ;;  %vm97_vm2 = vcmp.lt.s32.totalorder %v78_v25, 1  ;;  %vm98_vm3 = vcmp.lt.s32.totalorder %v78_v25, 2 }
  0x25   :  { %v83_v37 = vshrl.u32 %v604_v30, %v80_v26  ;;  %v86_v38 = vshrl.u32 %v605_v32, %v80_v26  ;;  %v81_v41 = vshrl.u32 %v603_v28, %v80_v26  ;;  %v89_v42 = vshrl.u32 %v606_v34, %v80_v26 }
  0x26   :  { %v92_v43 = vshrl.u32 %v607_v39, %v80_v26  ;;  %v95_v45 = vshrl.u32 %v608_v44, %v80_v26  ;;  %vm99_vm4 = vcmp.lt.s32.totalorder %v78_v25, 3  ;;  %vm100_vm5 = vcmp.lt.s32.totalorder %v78_v25, 4 }
  0x27   :  { %v84_v49 = vor.u32 %v83_v37, %v82_v29  ;;  %v87_v50 = vor.u32 %v86_v38, %v85_v31  ;;  %v90_v51 = vor.u32 %v89_v42, %v88_v33  ;;  %v183_v11 = vsub.s32 32, %v182_v48 }
  0x28   :  { %v93_v52 = vor.u32 %v92_v43, %v91_v35  ;;  %v96_v53 = vor.u32 %v95_v45, %v94_v40  ;;  %v185_v12 = vshll.u32 %v603_v28, %v182_v48  ;;  %v188_v15 = vshll.u32 %v604_v30, %v182_v48 }
  0x29   :  { %v101_v54 = vsel %vm97_vm2, %v81_v41, %v84_v49  ;;  %v102_v55 = vsel %vm100_vm5, %v90_v51, 2102212464  ;;  %v105_v56 = vsel %vm97_vm2, %v84_v49, %v87_v50  ;;  %v109_v60 = vsel %vm97_vm2, %v87_v50, %v90_v51 }
  0x2a   :  { %v106_v57 = vsel %vm100_vm5, %v93_v52, 920167782  ;;  %v103_v58 = vsel %vm99_vm4, %v87_v50, %v102_v55  ;;  %v110_v61 = vsel %vm100_vm5, %v96_v53, 1326507024  ;;  %v191_v16 = vshll.u32 %v605_v32, %v182_v48 }
  0x2b   :  { %v107_v59 = vsel %vm99_vm4, %v90_v51, %v106_v57  ;;  %v111_v63 = vsel %vm99_vm4, %v93_v52, %v110_v61  ;;  %v104_v0 = vsel %vm98_vm3, %v101_v54, %v103_v58  ;;  %v194_v17 = vshll.u32 %v606_v34, %v182_v48 }
  0x2c   :  { %v108_v62 = vsel %vm98_vm3, %v105_v56, %v107_v59  ;;  %v112_v1 = vsel %vm98_vm3, %v109_v60, %v111_v63  ;;  %v120_v13 = vmul.u32 %v113_v46, %v104_v0  ;;  %v186_v19 = vshrl.u32 %v604_v30, %v183_v11 }
  0x2d   :  { %v643_v2 = vmul.u32.u64.low %v113_v46, %v108_v62  ;;  %v644_v3 = vmul.u32.u64.high %v113_v46, %v108_v62, %v643_v2  ;;  %v647_v4 = vmul.u32.u64.low %v113_v46, %v112_v1  ;;  %v648_v5 = vmul.u32.u64.high %v113_v46, %v112_v1, %v647_v4 }
  0x2e   :  { %v189_v20 = vshrl.u32 %v605_v32, %v183_v11  ;;  %v197_v21 = vshll.u32 %v607_v39, %v182_v48  ;;  %v192_v23 = vshrl.u32 %v606_v34, %v183_v11  ;;  %v195_v24 = vshrl.u32 %v607_v39, %v183_v11  ;;  %v25_v48 = vld [vmem:[#allocation2 + $0x10] sm:$0xff]  ;;  %v541_v4 = vpop.eup %540 }
  0x2f   :  { %v123_v18 = vadd.s32 1, %v644_v3  ;;  %vm122_vm6 = vc.u32 %v648_v5, %v643_v2  ;;  %v187_v26 = vor.u32 %v186_v19, %v185_v12  ;;  %v198_v29 = vshrl.u32 %v608_v44, %v183_v11 }
  0x30   :  { %v190_v27 = vor.u32 %v189_v20, %v188_v15  ;;  %v193_v33 = vor.u32 %v192_v23, %v191_v16  ;;  %v196_v35 = vor.u32 %v195_v24, %v194_v17  ;;  %vm200_vm7 = vcmp.lt.s32.totalorder %v181_v10, 1 }
  0x31   :  { %v124_v25 = vsel %vm122_vm6, %v123_v18, %v644_v3  ;;  %v184_v36 = vshrl.u32 %v603_v28, %v183_v11  ;;  %v199_v30 = vor.u32 %v198_v29, %v197_v21  ;;  %vm202_vm8 = vcmp.lt.s32.totalorder %v181_v10, 3 }
  0x32   :  { %v125_v31 = vadd.s32 %v124_v25, %v120_v13  ;;  %vm201_vm9 = vcmp.lt.s32.totalorder %v181_v10, 2  ;;  %vm203_vm10 = vcmp.lt.s32.totalorder %v181_v10, 4  ;;  %v208_v37 = vsel %vm200_vm7, %v187_v26, %v190_v27 }
  0x33   :  { %v205_v38 = vsel %vm203_vm10, %v193_v33, 2102212464  ;;  %v209_v34 = vsel %vm203_vm10, %v196_v35, 920167782  ;;  %v216_v39 = vshll.u32 %v176_v22, 8  ;;  %v212_v42 = vsel %vm200_vm7, %v190_v27, %v193_v33 }
  0x34   :  { %v126_v32 = vadd.s32 536870912, %v125_v31  ;;  %v210_v41 = vsel %vm202_vm8, %v193_v33, %v209_v34  ;;  %v204_v43 = vsel %vm200_vm7, %v184_v36, %v187_v26  ;;  %v206_v44 = vsel %vm202_vm8, %v190_v27, %v205_v38 }
  0x35   :  { %v211_v28 = vsel %vm201_vm9, %v208_v37, %v210_v41  ;;  %v213_v45 = vsel %vm203_vm10, %v199_v30, 1326507024  ;;  %v207_v54 = vsel %vm201_vm9, %v204_v43, %v206_v44  ;;  %v28_v55 = vshrl.u32 %v25_v48, 9 }
  0x36   :  { %v659_v40 = vshrl.u32 %v126_v32, 30  ;;  %v214_v49 = vsel %vm202_vm8, %v196_v35, %v213_v45  ;;  %v667_v51 = vmul.u32.u64.low %v216_v39, %v211_v28  ;;  %v668_v52 = vmul.u32.u64.high %v216_v39, %v211_v28, %v667_v51 }
  0x37   :  { %v215_v50 = vsel %vm201_vm9, %v212_v42, %v214_v49  ;;  %v223_v59 = vmul.u32 %v216_v39, %v207_v54  ;;  %v30_v62 = vor.u32 1065353216, %v28_v55  ;;  %v121_v10 = vadd.s32 %v643_v2, %v648_v5 }
  0x38   :  { %v128_v46 = vshll.u32 %v659_v40, 30  ;;  %v671_v56 = vmul.u32.u64.low %v216_v39, %v215_v50  ;;  %v672_v57 = vmul.u32.u64.high %v216_v39, %v215_v50, %v671_v56  ;;  %v226_v60 = vadd.s32 1, %v668_v52 }
  0x39   :  { %v40_v6 = vsub.f32 2.0, %v30_v62  ;;  %v44_v13 = vmul.f32 0.6931472, %v541_v4  ;;  %v151_v33 = vsub.s32 4, %v659_v40  ;;  %vm709_vm2 = vcmp.le.f32.partialorder %v168_v47, 0.7853982 }
  0x3a   :  { %v129_v53 = vsub.s32 %v125_v31, %v128_v46  ;;  %vm225_vm11 = vc.u32 %v672_v57, %v667_v51  ;;  %v224_v32 = vadd.s32 %v667_v51, %v672_v57  ;;  %vm157_vm10 = vweird.f32 %v626_v8 }
  0x3b   :  { %v227_v0 = vsel %vm225_vm11, %v226_v60, %v668_v52  ;;  %542 = vlog2.f32 %v40_v6  ;;  %v682_v22 = vmul.f32 -2.0, %v44_v13  ;;  %v152_v34 = vsel %vm67_vm13, %v151_v33, %v659_v40 }
  0x3c   :  { %v131_v58 = vsub.s32 0, %v129_v53  ;;  %v228_v1 = vadd.s32 %v227_v0, %v223_v59  ;;  %v154_v46 = vsel %vm689_vm14, 0, %v152_v34 }
  0x3d   :  { %544 = vrsqrt.f32 %v682_v22  ;;  %vm51_vm0 = vcmp.eq.f32.partialorder %v682_v22, inf  ;;  %v158_v56 = vand.u32 3, %v154_v46  ;;  %vm53_vm3 = vcmp.eq.f32.partialorder %v682_v22, 0.0 }
  0x3e   :  { %v507_v61 = vmin.u32 %v131_v58, %v129_v53  ;;  %v229_v7 = vadd.s32 536870912, %v228_v1 }
  0x3f   :  { %vm160_vm4 = vcmp.eq.s32.totalorder %v158_v56, 0  ;;  %vm163_vm5 = vcmp.eq.s32.totalorder %v158_v56, 2  ;;  %vm159_vm8 = vcmp.lt.s32.totalorder %v158_v56, 2 }
  0x40   :  { %v133_v63 = vclz %v507_v61  ;;  %v679_v12 = vshrl.u32 %v229_v7, 30 }
  0x42   :  { %v508_v3 = vadd.s32 4294967294, %v133_v63  ;;  %v231_v18 = vshll.u32 %v679_v12, 30  ;;  %v254_v59 = vsub.s32 4, %v679_v12  ;;  %v54_v63 = vand.u32 2147483648, %v682_v22 }
  0x44   :  { %vm509_vm12 = vcmp.lt.s32.totalorder %v508_v3, 0  ;;  %v232_v21 = vsub.s32 %v228_v1, %v231_v18  ;;  %v255_v6 = vsel %vm170_vm1, %v254_v59, %v679_v12 }
  0x45   :  { %v136_v11 = vsel %vm509_vm12, 0, %v508_v3  ;;  %v257_v12 = vsel %vm709_vm2, 0, %v255_v6 }
  0x46   :  { %v137_v15 = vsub.s32 32, %v136_v11  ;;  %v138_v16 = vshll.u32 %v129_v53, %v136_v11  ;;  %v141_v17 = vsub.s32 4294967266, %v136_v11  ;;  %v234_v25 = vsub.s32 0, %v232_v21 }
  0x47   :  { %v368_v53 = vadd.s32 3, %v154_v46 }
  0x48   :  { %v139_v19 = vshrl.u32 %v121_v10, %v137_v15  ;;  %v142_v20 = vadd.s32 127, %v141_v17  ;;  %v511_v26 = vmin.u32 %v234_v25, %v232_v21  ;;  %v543_v37 = vpop.eup %542  ;;  %v261_v25 = vand.u32 3, %v257_v12 }
  0x49   :  { %v46_v14 = vmul.f32 0.6931472, %v543_v37  ;;  %v369_v58 = vand.u32 3, %v368_v53 }
  0x4a   :  { %v140_v23 = vor.u32 %v139_v19, %v138_v16  ;;  %v143_v24 = vshll.u32 %v142_v20, 23  ;;  %v236_v29 = vclz %v511_v26  ;;  %v545_v50 = vpop.eup %544 }
  0x4b   :  { %v700_v40 = vmul.f32 -2.0, %v46_v14  ;;  %v50_v55 = vmul.f32 %v545_v50, %v682_v22  ;;  %vm374_vm6 = vcmp.eq.s32.totalorder %v369_v58, 2  ;;  %vm371_vm7 = vcmp.eq.s32.totalorder %v369_v58, 0 }
  0x4c   :  { %v144_v2 = vor.u32 4788187, %v143_v24  ;;  %v147_v5 = vcvt.s32.f32 %v140_v23  ;;  %v512_v35 = vadd.s32 4294967294, %v236_v29  ;;  %vm370_vm9 = vcmp.lt.s32.totalorder %v369_v58, 2 }
  0x4d   :  { %v52_v62 = vsel %vm51_vm0, %v682_v22, %v50_v55  ;;  %v472_v24 = vadd.s32 3, %v257_v12  ;;  %vm58_vm11 = vcmp.eq.f32.partialorder %v700_v40, inf  ;;  %vm60_vm12 = vcmp.eq.f32.partialorder %v700_v40, 0.0 }
  0x4e   :  { %v145_v27 = vand.u32 2147483647, %v144_v2  ;;  %vm513_vm15 = vcmp.lt.s32.totalorder %v512_v35, 0  ;;  %v55_v13 = vsel %vm53_vm3, %v54_v63, %v52_v62  ;;  %v61_v26 = vand.u32 2147483648, %v700_v40 }
  0x4f   :  { %v239_v39 = vsel %vm513_vm15, 0, %v512_v35  ;;  %v473_v2 = vand.u32 3, %v472_v24  ;;  %vm263_vm15 = vcmp.eq.s32.totalorder %v261_v25, 0  ;;  %vm260_vm3 = vweird.f32 %v628_v9 }
  0x50   :  { %v148_v31 = vmul.f32 %v147_v5, %v145_v27  ;;  %v240_v42 = vsub.s32 32, %v239_v39  ;;  %v241_v43 = vshll.u32 %v232_v21, %v239_v39  ;;  %v244_v44 = vsub.s32 4294967266, %v239_v39 }
  0x51   :  { %vm475_vm0 = vcmp.eq.s32.totalorder %v473_v2, 0 }
  0x52   :  { %v149_v30 = vxor.u32 2147483648, %v148_v31  ;;  %v242_v28 = vshrl.u32 %v224_v32, %v240_v42  ;;  %v245_v45 = vadd.s32 127, %v244_v44 }
  0x54   :  { %v150_v38 = vsel %vm67_vm13, %v149_v30, %v148_v31  ;;  %v243_v48 = vor.u32 %v242_v28, %v241_v43  ;;  %v246_v49 = vshll.u32 %v245_v45, 23  ;;  %vm266_vm13 = vcmp.eq.s32.totalorder %v261_v25, 2 }
  0x55   :  { %v153_v41 = vsel %vm689_vm14, %v626_v8, %v150_v38  ;;  %vm478_vm14 = vcmp.eq.s32.totalorder %v473_v2, 2 }
  0x56   :  { %546 = vcosq.f32 %v153_v41  ;;  %v247_v51 = vor.u32 4788187, %v246_v49  ;;  %v250_v52 = vcvt.s32.f32 %v243_v48 }
  0x57   :  { %548 = vsinq.f32 %v153_v41 }
  0x58   :  { %v248_v54 = vand.u32 2147483647, %v247_v51  ;;  %550 = vrsqrt.f32 %v700_v40 }
  0x5a   :  { %v251_v57 = vmul.f32 %v250_v52, %v248_v54 }
  0x5c   :  { %v252_v61 = vxor.u32 2147483648, %v251_v57 }
  0x5e   :  { %v253_v1 = vsel %vm170_vm1, %v252_v61, %v251_v57  ;;  %vm262_vm1 = vcmp.lt.s32.totalorder %v261_v25, 2 }
  0x5f   :  { %v256_v47 = vsel %vm709_vm2, %v628_v9, %v253_v1  ;;  %vm474_vm2 = vcmp.lt.s32.totalorder %v473_v2, 2 }
  0x60   :  { %552 = vcosq.f32 %v256_v47 }
  0x61   :  { %554 = vsinq.f32 %v256_v47 }
  0x63   :  { %v547_v0 = vpop.eup %546 }
  0x64   :  { %v549_v3 = vpop.eup %548  ;;  %v164_v4 = vxor.u32 2147483648, %v547_v0 }
  0x65   :  { %v161_v7 = vxor.u32 2147483648, %v549_v3  ;;  %v551_v8 = vpop.eup %550 }
  0x66   :  { %v165_v10 = vsel %vm163_vm5, %v164_v4, %v549_v3  ;;  %v376_v11 = vsel %vm374_vm6, %v164_v4, %v549_v3  ;;  %v57_v22 = vmul.f32 %v551_v8, %v700_v40 }
  0x67   :  { %v162_v15 = vsel %vm160_vm4, %v547_v0, %v161_v7  ;;  %v373_v16 = vsel %vm371_vm7, %v547_v0, %v161_v7 }
  0x68   :  { %v166_v17 = vsel %vm159_vm8, %v162_v15, %v165_v10  ;;  %v377_v18 = vsel %vm370_vm9, %v373_v16, %v376_v11  ;;  %v59_v29 = vsel %vm58_vm11, %v700_v40, %v57_v22 }
  0x69   :  { %v167_v19 = vsel %vm157_vm10, nan, %v166_v17  ;;  %v378_v20 = vsel %vm157_vm10, nan, %v377_v18  ;;  %v62_v30 = vsel %vm60_vm12, %v61_v26, %v59_v29 }
  0x6a   :  { %v271_v21 = vmul.f32 %v167_v19, %v55_v13  ;;  %v483_v23 = vmul.f32 %v378_v20, %v55_v13 }
  0x6c   :  { %273 = vst [vmem:[#allocation5] sm:$0xff] %v271_v21  ;;  %485 = vst [vmem:[#allocation5 + $0x8] sm:$0xff] %v483_v23 }
  0x6d   :  { %v553_v5 = vpop.eup %552 }
  0x6e   :  { %v555_v27 = vpop.eup %554  ;;  %v267_v31 = vxor.u32 2147483648, %v553_v5 }
  0x6f   :  { %v264_v33 = vxor.u32 2147483648, %v555_v27 }
  0x70   :  { %v268_v35 = vsel %vm266_vm13, %v267_v31, %v555_v27  ;;  %v480_v36 = vsel %vm478_vm14, %v267_v31, %v555_v27 }
  0x71   :  { %v265_v32 = vsel %vm263_vm15, %v553_v5, %v264_v33  ;;  %v477_v37 = vsel %vm475_vm0, %v553_v5, %v264_v33 }
  0x72   :  { %v269_v38 = vsel %vm262_vm1, %v265_v32, %v268_v35  ;;  %v481_v34 = vsel %vm474_vm2, %v477_v37, %v480_v36 }
  0x73   :  { %v270_v39 = vsel %vm260_vm3, nan, %v269_v38  ;;  %v482_v41 = vsel %vm260_vm3, nan, %v481_v34 }
  0x74   :  { %v272_v42 = vmul.f32 %v270_v39, %v62_v30  ;;  %v484_v43 = vmul.f32 %v482_v41, %v62_v30 }
  0x76   :  { %274 = vst [vmem:[#allocation5 + $0x10] sm:$0xff] %v272_v42  ;;  %486 = vst [vmem:[#allocation5 + $0x18] sm:$0xff] %v484_v43 }
  0x77   :  { %587 = shalt.err (!%p584_p9)
}
  0x78   :  { %498 = dma.vmem_to_hbm [thread:$0]  %s493_s13, 512, %s739_s1, [#allocation4], %s601_s9, %s601_s9, %s602_s10  }
  0x79   :  { %598 = dma.done.wait [#allocation4], 512  }
  0x7a   :  { %599 = vsyncadd [#allocation4], 4294966784 }
  0x7b   :  { %502 = vsyncpa [#allocation3], 1 }
  0x7c   :  { %503 = vsyncpa [#allocation4], 1 }

</bundles_post_ra>
